<compile_context>
chip_gen: v6e
topology: v6e:2x2x1
jax: 0.10.0
libtpu: 0.0.40
codegen_flags: <defaults>
</compile_context>

<pallas_src>
import functools

import numpy as np
import jax
import jax.numpy as jnp
from jax.experimental import pallas as pl
from jax.experimental.pallas import tpu as pltpu

FEAT = 24          # input / output feature width of each CustomRNN
BN_EPS = 1e-5      # PyTorch BatchNorm1d default eps


def _round_up(v, m):
    return ((v + m - 1) // m) * m


# --------------------------------------------------------------------------
# Kernels
# --------------------------------------------------------------------------
def _seq_kernel(x_ref, par_ref, out_ref, *, num_appliance, pad):
    """flag=True path: appliance a's input is agg - pred_{a-1}; inherently a
    sequential chain.  Static unroll over appliances and layers, aggregate
    carried as a vreg-resident value (no scratch, no grid)."""
    A, P = num_appliance, pad
    agg = x_ref[...]                                    # (N, P); pad lanes are 0
    for a in range(A):                                  # static unroll (A tiny)
        h = agg
        for l in range(4):                              # static unroll
            base = a * 4 + l
            w = par_ref[base, :P, :]                    # (P, P) zero-padded weight
            b = par_ref[base, P:P + 1, :]               # (1, P) zero-padded bias
            h = jnp.maximum(
                jnp.dot(h, w, preferred_element_type=jnp.float32) + b, 0.0)
        pred = jnp.minimum(h, agg)                      # pred = min(pred, x)
        out_ref[a] = pred
        agg = agg - pred


def _bd_kernel(x_ref, par_ref, out_ref, *, num_appliance, pad):
    """flag=False path: residuals use gt only, so the A aggregates arrive
    lane-stacked as (N, A*P) and all appliances share 4 block-diagonal MXU
    dots; one lane-dense full-ref store at the end."""
    AP = num_appliance * pad
    x0 = x_ref[...]                                     # (N, A*P) stacked aggregates
    h = x0
    for l in range(4):                                  # static unroll
        w = par_ref[l, :AP, :]                          # (A*P, A*P) block-diag weight
        b = par_ref[l, AP:AP + 1, :]                    # (1, A*P) packed bias
        h = jnp.maximum(
            jnp.dot(h, w, preferred_element_type=jnp.float32) + b, 0.0)
    out_ref[...] = jnp.minimum(h, x0)


# --------------------------------------------------------------------------
# One-time host-side parameter preparation (BN fold + slab packing)
# --------------------------------------------------------------------------
def _fold_bn_np(params):
    """Fold each post-ReLU BatchNorm affine (s_k, t_k) into the next Linear.

    Forward order is Linear -> Dropout(id) -> ReLU -> BN -> next Linear, so
    lin_{k+1}(s*h + t) = h @ (s^T * W_{k+1}) + (t @ W_{k+1} + b_{k+1}) exactly.
    """
    p = {k: np.asarray(v, dtype=np.float32) for k, v in params.items()}
    f = {"w1": p["w1"], "b1": p["b1"]}
    for bn, nxt in ((1, 2), (2, 3), (3, 4)):
        s, t = p[f"s{bn}"], p[f"t{bn}"]                 # (A, 1, S)
        w, b = p[f"w{nxt}"], p[f"b{nxt}"]               # (A, S, S'), (A, 1, S')
        f[f"w{nxt}"] = np.swapaxes(s, 1, 2) * w
        f[f"b{nxt}"] = np.matmul(t, w) + b
    return f


def pack_params(params):
    """Call ONCE at init.  Returns two contiguous f32 slabs:
       seq : (A*4, P+1, P)    rows [:P] = weight, row [P] = bias   (flag=True)
       bd  : (4, A*P+1, A*P)  block-diagonal weights + packed bias (flag=False)
    P = max layer width rounded up to 8 so every in-kernel slice is aligned.
    Zero padding of unused rows/cols keeps the padded math exact."""
    f = _fold_bn_np(params)
    A = f["w1"].shape[0]
    widths = [f["w1"].shape[1]] + [f[f"w{l}"].shape[2] for l in (1, 2, 3, 4)]
    P = _round_up(max(widths), 8)

    seq = np.zeros((A * 4, P + 1, P), np.float32)
    bd = np.zeros((4, A * P + 1, A * P), np.float32)
    for l in range(4):
        w, b = f[f"w{l + 1}"], f[f"b{l + 1}"]
        fin, fout = w.shape[1], w.shape[2]
        for a in range(A):
            seq[a * 4 + l, :fin, :fout] = w[a]
            seq[a * 4 + l, P, :fout] = b[a, 0]
            bd[l, a * P:a * P + fin, a * P:a * P + fout] = w[a]
            bd[l, A * P, a * P:a * P + fout] = b[a, 0]
    return {"seq": jnp.asarray(seq), "bd": jnp.asarray(bd)}


# --------------------------------------------------------------------------
# Forward wrappers (jit'ed; pre/post ops fuse into the same executable)
# --------------------------------------------------------------------------
_VMEM = pl.BlockSpec(memory_space=pltpu.MemorySpace.VMEM)   # whole array in VMEM


@jax.jit
def _forward_seq(x, seq_slab):
    """flag=True: sequential per-appliance chain (preds feed the residual)."""
    N, F = x.shape
    n_slabs, _, P = seq_slab.shape
    A = n_slabs // 4
    xp = jnp.pad(x.astype(jnp.float32), ((0, 0), (0, P - F)))
    out = pl.pallas_call(
        functools.partial(_seq_kernel, num_appliance=A, pad=P),
        out_shape=jax.ShapeDtypeStruct((A, N, P), jnp.float32),
        in_specs=[_VMEM, _VMEM],
        out_specs=_VMEM,
    )(xp, seq_slab)
    return out[:, :, :F].reshape(A * N, F)


@jax.jit
def _forward_bd(x, gt, bd_slab):
    """flag=False: residual uses gt only -> precompute the A aggregates,
    lane-stack them, and run 4 block-diagonal matmuls in one kernel."""
    N, F = x.shape
    A = gt.shape[0]
    P = bd_slab.shape[2] // A
    shifted = jnp.concatenate(
        [jnp.zeros((1, N, F), jnp.float32), jnp.cumsum(gt, axis=0)[:-1]], axis=0)
    aggs = x[jnp.newaxis].astype(jnp.float32) - shifted           # (A, N, F)
    aggs = jnp.pad(aggs, ((0, 0), (0, 0), (0, P - F)))            # (A, N, P)
    xstack = jnp.swapaxes(aggs, 0, 1).reshape(N, A * P)           # (N, A*P)
    out = pl.pallas_call(
        functools.partial(_bd_kernel, num_appliance=A, pad=P),
        out_shape=jax.ShapeDtypeStruct((N, A * P), jnp.float32),
        in_specs=[_VMEM, _VMEM],
        out_specs=_VMEM,
    )(xstack, bd_slab)
    preds = jnp.swapaxes(out.reshape(N, A, P), 0, 1)              # (A, N, P)
    return preds[:, :, :F].reshape(A * N, F)


def appliances_rnn_forward(x, gt, packed, *, flag=True):
    """x: (N, 24); gt: (A, N, 24).  Returns (A*N, 24) == torch.cat(preds, 0).

    `flag` mirrors the host-side `np.random.random() > args[1]` coin flip in
    the PyTorch module; it must be a static Python bool (two cached compiles).
    """
    if flag:
        return _forward_seq(x, packed["seq"])
    return _forward_bd(x, gt, packed["bd"])


# --------------------------------------------------------------------------
# Parameter init + pure-jnp reference (for a correctness check)
# --------------------------------------------------------------------------
def init_params(key, num_appliance, size1, size2, size3):
    """PyTorch-Linear-style uniform init; eval-mode BatchNorm1d defaults."""
    dims = [(FEAT, size1), (size1, size2), (size2, size3), (size3, FEAT)]
    params = {}
    keys = jax.random.split(key, len(dims))
    for li, (fin, fout) in enumerate(dims, start=1):
        bound = float(1.0 / (fin ** 0.5))
        wkey, bkey = jax.random.split(keys[li - 1])
        # weights stored as (A, in, out) == transposed PyTorch layout
        params[f"w{li}"] = jax.random.uniform(
            wkey, (num_appliance, fin, fout), jnp.float32, -bound, bound)
        params[f"b{li}"] = jax.random.uniform(
            bkey, (num_appliance, 1, fout), jnp.float32, -bound, bound)
    # BatchNorm1d eval-mode affine with default init: y = x / sqrt(1 + eps)
    for li, s in zip((1, 2, 3), (size1, size2, size3)):
        params[f"s{li}"] = jnp.full(
            (num_appliance, 1, s), 1.0 / (1.0 + BN_EPS) ** 0.5, jnp.float32)
        params[f"t{li}"] = jnp.zeros((num_appliance, 1, s), jnp.float32)
    return params


def _reference(x, gt, params, *, flag):
    """Pure-jnp eval-mode reference with the BN affine applied explicitly."""
    A = params["w1"].shape[0]
    agg = x
    preds = []
    for a in range(A):
        h = agg
        for l in (1, 2, 3):
            h = jnp.maximum(h @ params[f"w{l}"][a] + params[f"b{l}"][a], 0.0)
            h = h * params[f"s{l}"][a] + params[f"t{l}"][a]
        h = jnp.maximum(h @ params["w4"][a] + params["b4"][a], 0.0)
        pred = jnp.minimum(h, agg)
        preds.append(pred)
        agg = agg - (pred if flag else gt[a])
    return jnp.concatenate(preds, axis=0)


if __name__ == "__main__":
    key = jax.random.PRNGKey(0)
    kx, kgt, kp = jax.random.split(key, 3)

    num_appliance = 3
    size1, size2, size3 = 32, 16, 8
    N = 8   # small batch; multiple of the f32 sublane width (8)

    x = jax.random.uniform(kx, (N, FEAT), jnp.float32)
    gt = jax.random.uniform(kgt, (num_appliance, N, FEAT), jnp.float32)
    params = init_params(kp, num_appliance, size1, size2, size3)

    packed = pack_params(params)        # one-time: BN fold + slab packing (host)

    # flag = np.random.random() > args[1]; made deterministic here.
    out_t = jax.block_until_ready(appliances_rnn_forward(x, gt, packed, flag=True))
    out_f = jax.block_until_ready(appliances_rnn_forward(x, gt, packed, flag=False))

    assert out_t.shape == (num_appliance * N, FEAT)
    assert out_f.shape == (num_appliance * N, FEAT)
    assert bool(jnp.allclose(out_t, _reference(x, gt, params, flag=True),
                             rtol=1e-4, atol=1e-4))
    assert bool(jnp.allclose(out_f, _reference(x, gt, params, flag=False),
                             rtol=1e-4, atol=1e-4))

    print("KERNEL_OK")
</pallas_src>

<mosaic_0001>
module attributes {stable_mosaic.version = 11 : i64} {
  func.func @_seq_kernel(%arg0: memref<8x32xf32, #tpu.memory_space<vmem>>, %arg1: memref<12x33x32xf32, #tpu.memory_space<vmem>>, %arg2: memref<3x8x32xf32, #tpu.memory_space<vmem>>) attributes {dimension_semantics = [], scalar_prefetch = 0 : i64, scratch_operands = 0 : i64, tpu.core_type = #tpu.core_type<tc>} {
    %c0 = arith.constant 0 : index
    %c0_0 = arith.constant 0 : index
    %0 = vector.load %arg0[%c0, %c0_0] : memref<8x32xf32, #tpu.memory_space<vmem>>, vector<8x32xf32>
    %c0_1 = arith.constant 0 : index
    %c0_2 = arith.constant 0 : index
    %c0_3 = arith.constant 0 : index
    %1 = vector.load %arg1[%c0_1, %c0_2, %c0_3] : memref<12x33x32xf32, #tpu.memory_space<vmem>>, vector<1x32x32xf32>
    %2 = vector.shape_cast %1 : vector<1x32x32xf32> to vector<32x32xf32>
    %c0_4 = arith.constant 0 : index
    %c32 = arith.constant 32 : index
    %c0_5 = arith.constant 0 : index
    %3 = vector.load %arg1[%c0_4, %c32, %c0_5] : memref<12x33x32xf32, #tpu.memory_space<vmem>>, vector<1x1x32xf32>
    %4 = vector.shape_cast %3 : vector<1x1x32xf32> to vector<1x32xf32>
    %cst = arith.constant dense<0.000000e+00> : vector<8x32xf32>
    %5 = tpu.matmul %0, %2, %cst {dimension_numbers = #tpu.dot_dimension_numbers<[1], [0], [0], [1], [0, 0, 1, 1], [], []>} : vector<8x32xf32>, vector<32x32xf32>, vector<8x32xf32> -> vector<8x32xf32>
    %6 = vector.broadcast %4 : vector<1x32xf32> to vector<8x32xf32>
    %7 = arith.addf %5, %6 : vector<8x32xf32>
    %cst_6 = arith.constant 0.000000e+00 : f32
    %8 = vector.broadcast %cst_6 : f32 to vector<8x32xf32>
    %9 = arith.maximumf %7, %8 : vector<8x32xf32>
    %c1 = arith.constant 1 : index
    %c0_7 = arith.constant 0 : index
    %c0_8 = arith.constant 0 : index
    %10 = vector.load %arg1[%c1, %c0_7, %c0_8] : memref<12x33x32xf32, #tpu.memory_space<vmem>>, vector<1x32x32xf32>
    %11 = vector.shape_cast %10 : vector<1x32x32xf32> to vector<32x32xf32>
    %c1_9 = arith.constant 1 : index
    %c32_10 = arith.constant 32 : index
    %c0_11 = arith.constant 0 : index
    %12 = vector.load %arg1[%c1_9, %c32_10, %c0_11] : memref<12x33x32xf32, #tpu.memory_space<vmem>>, vector<1x1x32xf32>
    %13 = vector.shape_cast %12 : vector<1x1x32xf32> to vector<1x32xf32>
    %cst_12 = arith.constant dense<0.000000e+00> : vector<8x32xf32>
    %14 = tpu.matmul %9, %11, %cst_12 {dimension_numbers = #tpu.dot_dimension_numbers<[1], [0], [0], [1], [0, 0, 1, 1], [], []>} : vector<8x32xf32>, vector<32x32xf32>, vector<8x32xf32> -> vector<8x32xf32>
    %15 = vector.broadcast %13 : vector<1x32xf32> to vector<8x32xf32>
    %16 = arith.addf %14, %15 : vector<8x32xf32>
    %cst_13 = arith.constant 0.000000e+00 : f32
    %17 = vector.broadcast %cst_13 : f32 to vector<8x32xf32>
    %18 = arith.maximumf %16, %17 : vector<8x32xf32>
    %c2 = arith.constant 2 : index
    %c0_14 = arith.constant 0 : index
    %c0_15 = arith.constant 0 : index
    %19 = vector.load %arg1[%c2, %c0_14, %c0_15] : memref<12x33x32xf32, #tpu.memory_space<vmem>>, vector<1x32x32xf32>
    %20 = vector.shape_cast %19 : vector<1x32x32xf32> to vector<32x32xf32>
    %c2_16 = arith.constant 2 : index
    %c32_17 = arith.constant 32 : index
    %c0_18 = arith.constant 0 : index
    %21 = vector.load %arg1[%c2_16, %c32_17, %c0_18] : memref<12x33x32xf32, #tpu.memory_space<vmem>>, vector<1x1x32xf32>
    %22 = vector.shape_cast %21 : vector<1x1x32xf32> to vector<1x32xf32>
    %cst_19 = arith.constant dense<0.000000e+00> : vector<8x32xf32>
    %23 = tpu.matmul %18, %20, %cst_19 {dimension_numbers = #tpu.dot_dimension_numbers<[1], [0], [0], [1], [0, 0, 1, 1], [], []>} : vector<8x32xf32>, vector<32x32xf32>, vector<8x32xf32> -> vector<8x32xf32>
    %24 = vector.broadcast %22 : vector<1x32xf32> to vector<8x32xf32>
    %25 = arith.addf %23, %24 : vector<8x32xf32>
    %cst_20 = arith.constant 0.000000e+00 : f32
    %26 = vector.broadcast %cst_20 : f32 to vector<8x32xf32>
    %27 = arith.maximumf %25, %26 : vector<8x32xf32>
    %c3 = arith.constant 3 : index
    %c0_21 = arith.constant 0 : index
    %c0_22 = arith.constant 0 : index
    %28 = vector.load %arg1[%c3, %c0_21, %c0_22] : memref<12x33x32xf32, #tpu.memory_space<vmem>>, vector<1x32x32xf32>
    %29 = vector.shape_cast %28 : vector<1x32x32xf32> to vector<32x32xf32>
    %c3_23 = arith.constant 3 : index
    %c32_24 = arith.constant 32 : index
    %c0_25 = arith.constant 0 : index
    %30 = vector.load %arg1[%c3_23, %c32_24, %c0_25] : memref<12x33x32xf32, #tpu.memory_space<vmem>>, vector<1x1x32xf32>
    %31 = vector.shape_cast %30 : vector<1x1x32xf32> to vector<1x32xf32>
    %cst_26 = arith.constant dense<0.000000e+00> : vector<8x32xf32>
    %32 = tpu.matmul %27, %29, %cst_26 {dimension_numbers = #tpu.dot_dimension_numbers<[1], [0], [0], [1], [0, 0, 1, 1], [], []>} : vector<8x32xf32>, vector<32x32xf32>, vector<8x32xf32> -> vector<8x32xf32>
    %33 = vector.broadcast %31 : vector<1x32xf32> to vector<8x32xf32>
    %34 = arith.addf %32, %33 : vector<8x32xf32>
    %cst_27 = arith.constant 0.000000e+00 : f32
    %35 = vector.broadcast %cst_27 : f32 to vector<8x32xf32>
    %36 = arith.maximumf %34, %35 : vector<8x32xf32>
    %37 = arith.minimumf %36, %0 : vector<8x32xf32>
    %c0_28 = arith.constant 0 : index
    %c0_29 = arith.constant 0 : index
    %c0_30 = arith.constant 0 : index
    %38 = vector.load %arg2[%c0_28, %c0_29, %c0_30] : memref<3x8x32xf32, #tpu.memory_space<vmem>>, vector<1x8x32xf32>
    %39 = vector.shape_cast %38 : vector<1x8x32xf32> to vector<8x32xf32>
    %40 = vector.shape_cast %37 : vector<8x32xf32> to vector<1x8x32xf32>
    tpu.vector_store %arg2[%c0_28, %c0_29, %c0_30], %40 {strides = array<i32>} : memref<3x8x32xf32, #tpu.memory_space<vmem>>, vector<1x8x32xf32>,
    %41 = arith.subf %0, %37 : vector<8x32xf32>
    %c4 = arith.constant 4 : index
    %c0_31 = arith.constant 0 : index
    %c0_32 = arith.constant 0 : index
    %42 = vector.load %arg1[%c4, %c0_31, %c0_32] : memref<12x33x32xf32, #tpu.memory_space<vmem>>, vector<1x32x32xf32>
    %43 = vector.shape_cast %42 : vector<1x32x32xf32> to vector<32x32xf32>
    %c4_33 = arith.constant 4 : index
    %c32_34 = arith.constant 32 : index
    %c0_35 = arith.constant 0 : index
    %44 = vector.load %arg1[%c4_33, %c32_34, %c0_35] : memref<12x33x32xf32, #tpu.memory_space<vmem>>, vector<1x1x32xf32>
    %45 = vector.shape_cast %44 : vector<1x1x32xf32> to vector<1x32xf32>
    %cst_36 = arith.constant dense<0.000000e+00> : vector<8x32xf32>
    %46 = tpu.matmul %41, %43, %cst_36 {dimension_numbers = #tpu.dot_dimension_numbers<[1], [0], [0], [1], [0, 0, 1, 1], [], []>} : vector<8x32xf32>, vector<32x32xf32>, vector<8x32xf32> -> vector<8x32xf32>
    %47 = vector.broadcast %45 : vector<1x32xf32> to vector<8x32xf32>
    %48 = arith.addf %46, %47 : vector<8x32xf32>
    %cst_37 = arith.constant 0.000000e+00 : f32
    %49 = vector.broadcast %cst_37 : f32 to vector<8x32xf32>
    %50 = arith.maximumf %48, %49 : vector<8x32xf32>
    %c5 = arith.constant 5 : index
    %c0_38 = arith.constant 0 : index
    %c0_39 = arith.constant 0 : index
    %51 = vector.load %arg1[%c5, %c0_38, %c0_39] : memref<12x33x32xf32, #tpu.memory_space<vmem>>, vector<1x32x32xf32>
    %52 = vector.shape_cast %51 : vector<1x32x32xf32> to vector<32x32xf32>
    %c5_40 = arith.constant 5 : index
    %c32_41 = arith.constant 32 : index
    %c0_42 = arith.constant 0 : index
    %53 = vector.load %arg1[%c5_40, %c32_41, %c0_42] : memref<12x33x32xf32, #tpu.memory_space<vmem>>, vector<1x1x32xf32>
    %54 = vector.shape_cast %53 : vector<1x1x32xf32> to vector<1x32xf32>
    %cst_43 = arith.constant dense<0.000000e+00> : vector<8x32xf32>
    %55 = tpu.matmul %50, %52, %cst_43 {dimension_numbers = #tpu.dot_dimension_numbers<[1], [0], [0], [1], [0, 0, 1, 1], [], []>} : vector<8x32xf32>, vector<32x32xf32>, vector<8x32xf32> -> vector<8x32xf32>
    %56 = vector.broadcast %54 : vector<1x32xf32> to vector<8x32xf32>
    %57 = arith.addf %55, %56 : vector<8x32xf32>
    %cst_44 = arith.constant 0.000000e+00 : f32
    %58 = vector.broadcast %cst_44 : f32 to vector<8x32xf32>
    %59 = arith.maximumf %57, %58 : vector<8x32xf32>
    %c6 = arith.constant 6 : index
    %c0_45 = arith.constant 0 : index
    %c0_46 = arith.constant 0 : index
    %60 = vector.load %arg1[%c6, %c0_45, %c0_46] : memref<12x33x32xf32, #tpu.memory_space<vmem>>, vector<1x32x32xf32>
    %61 = vector.shape_cast %60 : vector<1x32x32xf32> to vector<32x32xf32>
    %c6_47 = arith.constant 6 : index
    %c32_48 = arith.constant 32 : index
    %c0_49 = arith.constant 0 : index
    %62 = vector.load %arg1[%c6_47, %c32_48, %c0_49] : memref<12x33x32xf32, #tpu.memory_space<vmem>>, vector<1x1x32xf32>
    %63 = vector.shape_cast %62 : vector<1x1x32xf32> to vector<1x32xf32>
    %cst_50 = arith.constant dense<0.000000e+00> : vector<8x32xf32>
    %64 = tpu.matmul %59, %61, %cst_50 {dimension_numbers = #tpu.dot_dimension_numbers<[1], [0], [0], [1], [0, 0, 1, 1], [], []>} : vector<8x32xf32>, vector<32x32xf32>, vector<8x32xf32> -> vector<8x32xf32>
    %65 = vector.broadcast %63 : vector<1x32xf32> to vector<8x32xf32>
    %66 = arith.addf %64, %65 : vector<8x32xf32>
    %cst_51 = arith.constant 0.000000e+00 : f32
    %67 = vector.broadcast %cst_51 : f32 to vector<8x32xf32>
    %68 = arith.maximumf %66, %67 : vector<8x32xf32>
    %c7 = arith.constant 7 : index
    %c0_52 = arith.constant 0 : index
    %c0_53 = arith.constant 0 : index
    %69 = vector.load %arg1[%c7, %c0_52, %c0_53] : memref<12x33x32xf32, #tpu.memory_space<vmem>>, vector<1x32x32xf32>
    %70 = vector.shape_cast %69 : vector<1x32x32xf32> to vector<32x32xf32>
    %c7_54 = arith.constant 7 : index
    %c32_55 = arith.constant 32 : index
    %c0_56 = arith.constant 0 : index
    %71 = vector.load %arg1[%c7_54, %c32_55, %c0_56] : memref<12x33x32xf32, #tpu.memory_space<vmem>>, vector<1x1x32xf32>
    %72 = vector.shape_cast %71 : vector<1x1x32xf32> to vector<1x32xf32>
    %cst_57 = arith.constant dense<0.000000e+00> : vector<8x32xf32>
    %73 = tpu.matmul %68, %70, %cst_57 {dimension_numbers = #tpu.dot_dimension_numbers<[1], [0], [0], [1], [0, 0, 1, 1], [], []>} : vector<8x32xf32>, vector<32x32xf32>, vector<8x32xf32> -> vector<8x32xf32>
    %74 = vector.broadcast %72 : vector<1x32xf32> to vector<8x32xf32>
    %75 = arith.addf %73, %74 : vector<8x32xf32>
    %cst_58 = arith.constant 0.000000e+00 : f32
    %76 = vector.broadcast %cst_58 : f32 to vector<8x32xf32>
    %77 = arith.maximumf %75, %76 : vector<8x32xf32>
    %78 = arith.minimumf %77, %41 : vector<8x32xf32>
    %c1_59 = arith.constant 1 : index
    %c0_60 = arith.constant 0 : index
    %c0_61 = arith.constant 0 : index
    %79 = vector.load %arg2[%c1_59, %c0_60, %c0_61] : memref<3x8x32xf32, #tpu.memory_space<vmem>>, vector<1x8x32xf32>
    %80 = vector.shape_cast %79 : vector<1x8x32xf32> to vector<8x32xf32>
    %81 = vector.shape_cast %78 : vector<8x32xf32> to vector<1x8x32xf32>
    tpu.vector_store %arg2[%c1_59, %c0_60, %c0_61], %81 {strides = array<i32>} : memref<3x8x32xf32, #tpu.memory_space<vmem>>, vector<1x8x32xf32>,
    %82 = arith.subf %41, %78 : vector<8x32xf32>
    %c8 = arith.constant 8 : index
    %c0_62 = arith.constant 0 : index
    %c0_63 = arith.constant 0 : index
    %83 = vector.load %arg1[%c8, %c0_62, %c0_63] : memref<12x33x32xf32, #tpu.memory_space<vmem>>, vector<1x32x32xf32>
    %84 = vector.shape_cast %83 : vector<1x32x32xf32> to vector<32x32xf32>
    %c8_64 = arith.constant 8 : index
    %c32_65 = arith.constant 32 : index
    %c0_66 = arith.constant 0 : index
    %85 = vector.load %arg1[%c8_64, %c32_65, %c0_66] : memref<12x33x32xf32, #tpu.memory_space<vmem>>, vector<1x1x32xf32>
    %86 = vector.shape_cast %85 : vector<1x1x32xf32> to vector<1x32xf32>
    %cst_67 = arith.constant dense<0.000000e+00> : vector<8x32xf32>
    %87 = tpu.matmul %82, %84, %cst_67 {dimension_numbers = #tpu.dot_dimension_numbers<[1], [0], [0], [1], [0, 0, 1, 1], [], []>} : vector<8x32xf32>, vector<32x32xf32>, vector<8x32xf32> -> vector<8x32xf32>
    %88 = vector.broadcast %86 : vector<1x32xf32> to vector<8x32xf32>
    %89 = arith.addf %87, %88 : vector<8x32xf32>
    %cst_68 = arith.constant 0.000000e+00 : f32
    %90 = vector.broadcast %cst_68 : f32 to vector<8x32xf32>
    %91 = arith.maximumf %89, %90 : vector<8x32xf32>
    %c9 = arith.constant 9 : index
    %c0_69 = arith.constant 0 : index
    %c0_70 = arith.constant 0 : index
    %92 = vector.load %arg1[%c9, %c0_69, %c0_70] : memref<12x33x32xf32, #tpu.memory_space<vmem>>, vector<1x32x32xf32>
    %93 = vector.shape_cast %92 : vector<1x32x32xf32> to vector<32x32xf32>
    %c9_71 = arith.constant 9 : index
    %c32_72 = arith.constant 32 : index
    %c0_73 = arith.constant 0 : index
    %94 = vector.load %arg1[%c9_71, %c32_72, %c0_73] : memref<12x33x32xf32, #tpu.memory_space<vmem>>, vector<1x1x32xf32>
    %95 = vector.shape_cast %94 : vector<1x1x32xf32> to vector<1x32xf32>
    %cst_74 = arith.constant dense<0.000000e+00> : vector<8x32xf32>
    %96 = tpu.matmul %91, %93, %cst_74 {dimension_numbers = #tpu.dot_dimension_numbers<[1], [0], [0], [1], [0, 0, 1, 1], [], []>} : vector<8x32xf32>, vector<32x32xf32>, vector<8x32xf32> -> vector<8x32xf32>
    %97 = vector.broadcast %95 : vector<1x32xf32> to vector<8x32xf32>
    %98 = arith.addf %96, %97 : vector<8x32xf32>
    %cst_75 = arith.constant 0.000000e+00 : f32
    %99 = vector.broadcast %cst_75 : f32 to vector<8x32xf32>
    %100 = arith.maximumf %98, %99 : vector<8x32xf32>
    %c10 = arith.constant 10 : index
    %c0_76 = arith.constant 0 : index
    %c0_77 = arith.constant 0 : index
    %101 = vector.load %arg1[%c10, %c0_76, %c0_77] : memref<12x33x32xf32, #tpu.memory_space<vmem>>, vector<1x32x32xf32>
    %102 = vector.shape_cast %101 : vector<1x32x32xf32> to vector<32x32xf32>
    %c10_78 = arith.constant 10 : index
    %c32_79 = arith.constant 32 : index
    %c0_80 = arith.constant 0 : index
    %103 = vector.load %arg1[%c10_78, %c32_79, %c0_80] : memref<12x33x32xf32, #tpu.memory_space<vmem>>, vector<1x1x32xf32>
    %104 = vector.shape_cast %103 : vector<1x1x32xf32> to vector<1x32xf32>
    %cst_81 = arith.constant dense<0.000000e+00> : vector<8x32xf32>
    %105 = tpu.matmul %100, %102, %cst_81 {dimension_numbers = #tpu.dot_dimension_numbers<[1], [0], [0], [1], [0, 0, 1, 1], [], []>} : vector<8x32xf32>, vector<32x32xf32>, vector<8x32xf32> -> vector<8x32xf32>
    %106 = vector.broadcast %104 : vector<1x32xf32> to vector<8x32xf32>
    %107 = arith.addf %105, %106 : vector<8x32xf32>
    %cst_82 = arith.constant 0.000000e+00 : f32
    %108 = vector.broadcast %cst_82 : f32 to vector<8x32xf32>
    %109 = arith.maximumf %107, %108 : vector<8x32xf32>
    %c11 = arith.constant 11 : index
    %c0_83 = arith.constant 0 : index
    %c0_84 = arith.constant 0 : index
    %110 = vector.load %arg1[%c11, %c0_83, %c0_84] : memref<12x33x32xf32, #tpu.memory_space<vmem>>, vector<1x32x32xf32>
    %111 = vector.shape_cast %110 : vector<1x32x32xf32> to vector<32x32xf32>
    %c11_85 = arith.constant 11 : index
    %c32_86 = arith.constant 32 : index
    %c0_87 = arith.constant 0 : index
    %112 = vector.load %arg1[%c11_85, %c32_86, %c0_87] : memref<12x33x32xf32, #tpu.memory_space<vmem>>, vector<1x1x32xf32>
    %113 = vector.shape_cast %112 : vector<1x1x32xf32> to vector<1x32xf32>
    %cst_88 = arith.constant dense<0.000000e+00> : vector<8x32xf32>
    %114 = tpu.matmul %109, %111, %cst_88 {dimension_numbers = #tpu.dot_dimension_numbers<[1], [0], [0], [1], [0, 0, 1, 1], [], []>} : vector<8x32xf32>, vector<32x32xf32>, vector<8x32xf32> -> vector<8x32xf32>
    %115 = vector.broadcast %113 : vector<1x32xf32> to vector<8x32xf32>
    %116 = arith.addf %114, %115 : vector<8x32xf32>
    %cst_89 = arith.constant 0.000000e+00 : f32
    %117 = vector.broadcast %cst_89 : f32 to vector<8x32xf32>
    %118 = arith.maximumf %116, %117 : vector<8x32xf32>
    %119 = arith.minimumf %118, %82 : vector<8x32xf32>
    %c2_90 = arith.constant 2 : index
    %c0_91 = arith.constant 0 : index
    %c0_92 = arith.constant 0 : index
    %120 = vector.load %arg2[%c2_90, %c0_91, %c0_92] : memref<3x8x32xf32, #tpu.memory_space<vmem>>, vector<1x8x32xf32>
    %121 = vector.shape_cast %120 : vector<1x8x32xf32> to vector<8x32xf32>
    %122 = vector.shape_cast %119 : vector<8x32xf32> to vector<1x8x32xf32>
    tpu.vector_store %arg2[%c2_90, %c0_91, %c0_92], %122 {strides = array<i32>} : memref<3x8x32xf32, #tpu.memory_space<vmem>>, vector<1x8x32xf32>,
    return
  }
}

</mosaic_0001>

<bundles_post_ra>
// kernel: _forward_seq.1
= control target key start
LH: loop header
LB: loop body
LE: loop exit
PB: predicated region body
PF: predicated region fallthrough
CT: control target
= control target key end

     0   :  { %v1309_v0 = vmov 0.0   ;;  %vm1310_vm0 = vmmov 0   ;;  %vm21_vm1 = vcmask 261120   ;;  %s1615_s1 = inlined_call_operand.vmem [shape: f32[12,33,32], index: 1, kind: input, shape index: {}]   ;;  %s1616_s0 = inlined_call_operand.vmem [shape: f32[8,32], index: 0, kind: input, shape index: {}]   ;;  %s1617_s2 = inlined_call_operand.vmem [shape: f32[3,8,32], index: 2, kind: output, shape index: {}]  }
   0x1   :  { %1175 = vmatprep.subr.mxu0 %v1309_v0  ;;  %v15_v1 = vld [vmem:[%s1615_s1 + $0x18] sm:$0xff]  ;;  %v14_v2 = vld [vmem:[%s1615_s1 + $0x10] sm:$0xff]  ;;  %1183 = vmatprep.mubr.msk.f32.mxu0 %vm1310_vm0, %v1309_v0  ;;  %v1039_v3 = vld [vmem:[%s1615_s1 + $0x40] sm:$0xff] }
   0x2   :  { %1176 = vmatpush3.msra.mxu0 %v15_v1  ;;  %1186 = vmatprep.subr.mxu1 %v1309_v0  ;;  %v13_v4 = vld [vmem:[%s1615_s1 + $0x8] sm:$0xff]  ;;  %v12_v5 = vld [vmem:[%s1615_s1] sm:$0xff]  ;;  %v1038_v7 = vld [vmem:[%s1615_s1 + $0x38] sm:$0xff] }
   0x3   :  { %1177 = vmatprep.subr.mxu0 %v1309_v0  ;;  %1187 = vmatpush3.msra.mxu1 %v1039_v3  ;;  %v1353_v6 = vld [vmem:[%s1616_s0] sm:$0xff]  ;;  %v1037_v8 = vld [vmem:[%s1615_s1 + $0x30] sm:$0xff]  ;;  %v1036_v9 = vld [vmem:[%s1615_s1 + $0x28] sm:$0xff] }
   0x4   :  { %1178 = vmatpush3.msra.mxu0 %v14_v2  ;;  %1188 = vmatprep.subr.mxu1 %v1309_v0  ;;  %v1046_v10 = vld [vmem:[%s1615_s1 + $0x68] sm:$0xff]  ;;  %v1034_v11 = vld [vmem:[%s1615_s1 + $0x20] ss:$0 sm:$0xff]  ;;  %v1044_v17 = vld [vmem:[%s1615_s1 + $0x58] sm:$0xff] }
   0x5   :  { %1179 = vmatprep.subr.mxu0 %v1309_v0  ;;  %1194 = vmatprep.mubr.msk.f32.mxu1 %vm1310_vm0, %v1309_v0  ;;  %v1045_v16 = vld [vmem:[%s1615_s1 + $0x60] sm:$0xff]  ;;  %v1043_v18 = vld [vmem:[%s1615_s1 + $0x50] sm:$0xff]  ;;  %v1041_v20 = vld [vmem:[%s1615_s1 + $0x48] ss:$0 sm:$0xff] }
   0x6   :  { %1180 = vmatpush3.msra.mxu0 %v13_v4  ;;  %1189 = vmatpush3.msra.mxu1 %v1038_v7  ;;  %v1053_v19 = vld [vmem:[%s1615_s1 + $0x90] sm:$0xff]  ;;  %v1052_v25 = vld [vmem:[%s1615_s1 + $0x88] sm:$0xff]  ;;  %v1051_v26 = vld [vmem:[%s1615_s1 + $0x80] sm:$0xff] }
   0x7   :  { %1181 = vmatprep.subr.mxu0 %v1309_v0  ;;  %1190 = vmatprep.subr.mxu1 %v1309_v0  ;;  %v1050_v27 = vld [vmem:[%s1615_s1 + $0x78] sm:$0xff]  ;;  %v1048_v28 = vld [vmem:[%s1615_s1 + $0x70] ss:$0 sm:$0xff]  ;;  %v1058_v35 = vld [vmem:[%s1615_s1 + $0xa8] sm:$0xff] }
   0x8   :  { %1182 = vmatpush3.msra.mxu0 %v12_v5  ;;  %1191 = vmatpush3.msra.mxu1 %v1037_v8  ;;  %v1060_v33 = vld [vmem:[%s1615_s1 + $0xb8] sm:$0xff]  ;;  %v1059_v34 = vld [vmem:[%s1615_s1 + $0xb0] sm:$0xff]  ;;  %v1057_v36 = vld [vmem:[%s1615_s1 + $0xa0] sm:$0xff] }
   0x9   :  { %1184 = vmatmul.mubr.msk.f32.vlgmr.msra.gmra.mxu0 %vm21_vm1, %v1353_v6  ;;  %1197 = vmatprep.subr.mxu0 %v1309_v0  ;;  %v1067_v37 = vld [vmem:[%s1615_s1 + $0xe0] sm:$0xff]  ;;  %v1055_v38 = vld [vmem:[%s1615_s1 + $0x98] ss:$0 sm:$0xff]  ;;  %v1065_v46 = vld [vmem:[%s1615_s1 + $0xd0] sm:$0xff] }
   0xa   :  { %1205 = vmatprep.mubr.msk.f32.mxu0 %vm1310_vm0, %v1309_v0  ;;  %1192 = vmatprep.subr.mxu1 %v1309_v0  ;;  %v1066_v45 = vld [vmem:[%s1615_s1 + $0xd8] sm:$0xff]  ;;  %v1064_v47 = vld [vmem:[%s1615_s1 + $0xc8] sm:$0xff]  ;;  %v1062_v49 = vld [vmem:[%s1615_s1 + $0xc0] ss:$0 sm:$0xff] }
   0xb   :  { %1193 = vmatpush3.msra.mxu1 %v1036_v9  ;;  %1198 = vmatpush3.msra.mxu0 %v1046_v10  ;;  %v1074_v48 = vld [vmem:[%s1615_s1 + $0x108] sm:$0xff]  ;;  %v1073_v54 = vld [vmem:[%s1615_s1 + $0x100] sm:$0xff]  ;;  %v1072_v55 = vld [vmem:[%s1615_s1 + $0xf8] sm:$0xff] }
   0xc   :  { %1208 = vmatprep.subr.mxu1 %v1309_v0  ;;  %1199 = vmatprep.subr.mxu0 %v1309_v0  ;;  %v1071_v56 = vld [vmem:[%s1615_s1 + $0xf0] sm:$0xff]  ;;  %v1069_v58 = vld [vmem:[%s1615_s1 + $0xe8] ss:$0 sm:$0xff]  ;;  %v1079_v1 = vld [vmem:[%s1615_s1 + $0x120] sm:$0xff] }
   0xd   :  { %1200 = vmatpush3.msra.mxu0 %v1045_v16  ;;  %v1081_v57 = vld [vmem:[%s1615_s1 + $0x130] sm:$0xff]  ;;  %v1080_v63 = vld [vmem:[%s1615_s1 + $0x128] sm:$0xff]  ;;  %v1078_v2 = vld [vmem:[%s1615_s1 + $0x118] sm:$0xff] }
   0xe   :  { %1201 = vmatprep.subr.mxu0 %v1309_v0  ;;  %v1076_v3 = vld [vmem:[%s1615_s1 + $0x110] ss:$0 sm:$0xff]  ;;  %v1089_v8 = vld [vmem:[%s1615_s1 + $0x158] sm:$0xff]  ;;  %v1087_v10 = vld [vmem:[%s1615_s1 + $0x148] sm:$0xff] }
   0xf   :  { %1202 = vmatpush3.msra.mxu0 %v1044_v17  ;;  %v1088_v9 = vld [vmem:[%s1615_s1 + $0x150] sm:$0xff] }
  0x10   :  { %1203 = vmatprep.subr.mxu0 %v1309_v0 }
  0x11   :  { %1204 = vmatpush3.msra.mxu0 %v1043_v18 }
  0x12   :  { %1219 = vmatprep.subr.mxu0 %v1309_v0 }
  0xc9   :  { %v91_v12 = vpop.f32.mrf.mxu0 }
  0xca   :  { %v92_v13 = vadd.f32 %v1034_v11, %v91_v12  ;;  %v1086_v11 = vld [vmem:[%s1615_s1 + $0x140] sm:$0xff] }
  0xcb   :  { %v1185_v14 = vpop.f32.mrf.mxu0  ;;  %v1096_v12 = vld [vmem:[%s1615_s1 + $0x180] sm:$0xff] }
  0xcc   :  { %v95_v15 = vmax.f32 %v92_v13, 0.0  ;;  %v1083_v13 = vld [vmem:[%s1615_s1 + $0x138] ss:$0 sm:$0xff] }
  0xce   :  { %1195 = vmatmul.mubr.msk.f32.vlgmr.msra.gmra.mxu1 %vm21_vm1, %v95_v15 }
  0xcf   :  { %1216 = vmatprep.mubr.msk.f32.mxu1 %vm1310_vm0, %v1309_v0  ;;  %1209 = vmatpush3.msra.mxu1 %v1053_v19 }
  0xd0   :  { %1210 = vmatprep.subr.mxu1 %v1309_v0 }
  0xd1   :  { %1211 = vmatpush3.msra.mxu1 %v1052_v25 }
  0xd2   :  { %1212 = vmatprep.subr.mxu1 %v1309_v0 }
  0xd3   :  { %1213 = vmatpush3.msra.mxu1 %v1051_v26 }
  0xd4   :  { %1214 = vmatprep.subr.mxu1 %v1309_v0 }
  0xd5   :  { %1215 = vmatpush3.msra.mxu1 %v1050_v27 }
  0xd6   :  { %1230 = vmatprep.subr.mxu1 %v1309_v0 }
 0x18e   :  { %v175_v21 = vpop.f32.mrf.mxu1 }
 0x18f   :  { %v176_v22 = vadd.f32 %v1041_v20, %v175_v21  ;;  %v1095_v20 = vld [vmem:[%s1615_s1 + $0x178] sm:$0xff]  ;;  %v1094_v21 = vld [vmem:[%s1615_s1 + $0x170] sm:$0xff] }
 0x190   :  { %v1196_v23 = vpop.f32.mrf.mxu1 }
 0x191   :  { %v179_v24 = vmax.f32 %v176_v22, 0.0  ;;  %v1093_v22 = vld [vmem:[%s1615_s1 + $0x168] sm:$0xff] }
 0x192   :  { %v1103_v23 = vld [vmem:[%s1615_s1 + $0x1a8] sm:$0xff] }
 0x193   :  { %1206 = vmatmul.mubr.msk.f32.vlgmr.msra.gmra.mxu0 %vm21_vm1, %v179_v24  ;;  %v1091_v24 = vld [vmem:[%s1615_s1 + $0x160] ss:$0 sm:$0xff] }
 0x194   :  { %1227 = vmatprep.mubr.msk.f32.mxu0 %vm1310_vm0, %v1309_v0  ;;  %1220 = vmatpush3.msra.mxu0 %v1060_v33  ;;  %v1098_v33 = vld [vmem:[%s1615_s1 + $0x188] ss:$0 sm:$0xff] }
 0x195   :  { %1221 = vmatprep.subr.mxu0 %v1309_v0 }
 0x196   :  { %1222 = vmatpush3.msra.mxu0 %v1059_v34 }
 0x197   :  { %1223 = vmatprep.subr.mxu0 %v1309_v0 }
 0x198   :  { %1224 = vmatpush3.msra.mxu0 %v1058_v35 }
 0x199   :  { %1225 = vmatprep.subr.mxu0 %v1309_v0 }
 0x19a   :  { %1226 = vmatpush3.msra.mxu0 %v1057_v36 }
 0x19b   :  { %1241 = vmatprep.subr.mxu0 %v1309_v0 }
 0x253   :  { %v259_v29 = vpop.f32.mrf.mxu0 }
 0x254   :  { %v260_v30 = vadd.f32 %v1048_v28, %v259_v29  ;;  %v1102_v29 = vld [vmem:[%s1615_s1 + $0x1a0] sm:$0xff] }
 0x255   :  { %v1207_v31 = vpop.f32.mrf.mxu0 }
 0x256   :  { %v263_v32 = vmax.f32 %v260_v30, 0.0  ;;  %v1101_v30 = vld [vmem:[%s1615_s1 + $0x198] sm:$0xff]  ;;  %v1100_v31 = vld [vmem:[%s1615_s1 + $0x190] sm:$0xff] }
 0x258   :  { %1217 = vmatmul.mubr.msk.f32.vlgmr.msra.gmra.mxu1 %vm21_vm1, %v263_v32  ;;  %v1110_v32 = vld [vmem:[%s1615_s1 + $0x1d0] sm:$0xff] }
 0x259   :  { %1238 = vmatprep.mubr.msk.f32.mxu1 %vm1310_vm0, %v1309_v0  ;;  %1231 = vmatpush3.msra.mxu1 %v1067_v37 }
 0x25a   :  { %1232 = vmatprep.subr.mxu1 %v1309_v0 }
 0x25b   :  { %1233 = vmatpush3.msra.mxu1 %v1066_v45 }
 0x25c   :  { %1234 = vmatprep.subr.mxu1 %v1309_v0 }
 0x25d   :  { %1235 = vmatpush3.msra.mxu1 %v1065_v46  ;;  %v1112_v46 = vld [vmem:[%s1615_s1 + $0x1d8] ss:$0 sm:$0xff] }
 0x25e   :  { %1236 = vmatprep.subr.mxu1 %v1309_v0 }
 0x25f   :  { %1237 = vmatpush3.msra.mxu1 %v1064_v47 }
 0x260   :  { %1252 = vmatprep.subr.mxu1 %v1309_v0 }
 0x318   :  { %v343_v39 = vpop.f32.mrf.mxu1 }
 0x319   :  { %v344_v40 = vadd.f32 %v1055_v38, %v343_v39  ;;  %v1109_v38 = vld [vmem:[%s1615_s1 + $0x1c8] sm:$0xff]  ;;  %v1108_v39 = vld [vmem:[%s1615_s1 + $0x1c0] sm:$0xff] }
 0x31a   :  { %v1218_v41 = vpop.f32.mrf.mxu1 }
 0x31b   :  { %v347_v42 = vmax.f32 %v344_v40, 0.0  ;;  %v1107_v40 = vld [vmem:[%s1615_s1 + $0x1b8] sm:$0xff]  ;;  %v1105_v41 = vld [vmem:[%s1615_s1 + $0x1b0] ss:$0 sm:$0xff] }
 0x31d   :  { %v348_v43 = vmin.f32 %v347_v42, %v1353_v6 }
 0x31f   :  { %349 = vst.msk [vmem:[%s1617_s2] sm:$0xff] %vm21_vm1, %v348_v43  ;;  %v1452_v44 = vsub.f32 %v1353_v6, %v348_v43 }
 0x321   :  { %1228 = vmatmul.mubr.msk.f32.vlgmr.msra.gmra.mxu0 %vm21_vm1, %v1452_v44 }
 0x322   :  { %1249 = vmatprep.mubr.msk.f32.mxu0 %vm1310_vm0, %v1309_v0  ;;  %1242 = vmatpush3.msra.mxu0 %v1074_v48 }
 0x323   :  { %1243 = vmatprep.subr.mxu0 %v1309_v0 }
 0x324   :  { %1244 = vmatpush3.msra.mxu0 %v1073_v54 }
 0x325   :  { %1245 = vmatprep.subr.mxu0 %v1309_v0 }
 0x326   :  { %1246 = vmatpush3.msra.mxu0 %v1072_v55 }
 0x327   :  { %1247 = vmatprep.subr.mxu0 %v1309_v0 }
 0x328   :  { %1248 = vmatpush3.msra.mxu0 %v1071_v56 }
 0x329   :  { %1263 = vmatprep.subr.mxu0 %v1309_v0 }
 0x3e1   :  { %v430_v50 = vpop.f32.mrf.mxu0 }
 0x3e2   :  { %v431_v51 = vadd.f32 %v1062_v49, %v430_v50 }
 0x3e3   :  { %v1229_v52 = vpop.f32.mrf.mxu0 }
 0x3e4   :  { %v434_v53 = vmax.f32 %v431_v51, 0.0 }
 0x3e6   :  { %1239 = vmatmul.mubr.msk.f32.vlgmr.msra.gmra.mxu1 %vm21_vm1, %v434_v53 }
 0x3e7   :  { %1260 = vmatprep.mubr.msk.f32.mxu1 %vm1310_vm0, %v1309_v0  ;;  %1253 = vmatpush3.msra.mxu1 %v1081_v57 }
 0x3e8   :  { %1254 = vmatprep.subr.mxu1 %v1309_v0 }
 0x3e9   :  { %1255 = vmatpush3.msra.mxu1 %v1080_v63 }
 0x3ea   :  { %1256 = vmatprep.subr.mxu1 %v1309_v0 }
 0x3eb   :  { %1257 = vmatpush3.msra.mxu1 %v1079_v1 }
 0x3ec   :  { %1258 = vmatprep.subr.mxu1 %v1309_v0 }
 0x3ed   :  { %1259 = vmatpush3.msra.mxu1 %v1078_v2 }
 0x3ee   :  { %1274 = vmatprep.subr.mxu1 %v1309_v0 }
 0x4a6   :  { %v514_v59 = vpop.f32.mrf.mxu1 }
 0x4a7   :  { %v515_v60 = vadd.f32 %v1069_v58, %v514_v59 }
 0x4a8   :  { %v1240_v61 = vpop.f32.mrf.mxu1 }
 0x4a9   :  { %v518_v62 = vmax.f32 %v515_v60, 0.0 }
 0x4ab   :  { %1250 = vmatmul.mubr.msk.f32.vlgmr.msra.gmra.mxu0 %vm21_vm1, %v518_v62 }
 0x4ac   :  { %1271 = vmatprep.mubr.msk.f32.mxu0 %vm1310_vm0, %v1309_v0  ;;  %1264 = vmatpush3.msra.mxu0 %v1089_v8 }
 0x4ad   :  { %1265 = vmatprep.subr.mxu0 %v1309_v0 }
 0x4ae   :  { %1266 = vmatpush3.msra.mxu0 %v1088_v9 }
 0x4af   :  { %1267 = vmatprep.subr.mxu0 %v1309_v0 }
 0x4b0   :  { %1268 = vmatpush3.msra.mxu0 %v1087_v10 }
 0x4b1   :  { %1269 = vmatprep.subr.mxu0 %v1309_v0 }
 0x4b2   :  { %1270 = vmatpush3.msra.mxu0 %v1086_v11 }
 0x4b3   :  { %1285 = vmatprep.subr.mxu0 %v1309_v0 }
 0x56b   :  { %v598_v4 = vpop.f32.mrf.mxu0 }
 0x56c   :  { %v599_v5 = vadd.f32 %v1076_v3, %v598_v4 }
 0x56d   :  { %v1251_v6 = vpop.f32.mrf.mxu0 }
 0x56e   :  { %v602_v7 = vmax.f32 %v599_v5, 0.0 }
 0x570   :  { %1261 = vmatmul.mubr.msk.f32.vlgmr.msra.gmra.mxu1 %vm21_vm1, %v602_v7 }
 0x571   :  { %1282 = vmatprep.mubr.msk.f32.mxu1 %vm1310_vm0, %v1309_v0  ;;  %1275 = vmatpush3.msra.mxu1 %v1096_v12 }
 0x572   :  { %1276 = vmatprep.subr.mxu1 %v1309_v0 }
 0x573   :  { %1277 = vmatpush3.msra.mxu1 %v1095_v20 }
 0x574   :  { %1278 = vmatprep.subr.mxu1 %v1309_v0 }
 0x575   :  { %1279 = vmatpush3.msra.mxu1 %v1094_v21 }
 0x576   :  { %1280 = vmatprep.subr.mxu1 %v1309_v0 }
 0x577   :  { %1281 = vmatpush3.msra.mxu1 %v1093_v22 }
 0x578   :  { %1296 = vmatprep.subr.mxu1 %v1309_v0 }
 0x630   :  { %v682_v14 = vpop.f32.mrf.mxu1 }
 0x631   :  { %v683_v15 = vadd.f32 %v1083_v13, %v682_v14 }
 0x632   :  { %v1262_v16 = vpop.f32.mrf.mxu1 }
 0x633   :  { %v686_v17 = vmax.f32 %v683_v15, 0.0 }
 0x635   :  { %v687_v18 = vmin.f32 %v686_v17, %v1452_v44 }
 0x637   :  { %1085 = vst.msk [vmem:[%s1617_s2 + $0x8] sm:$0xff] %vm21_vm1, %v687_v18  ;;  %v690_v19 = vsub.f32 %v1452_v44, %v687_v18 }
 0x639   :  { %1272 = vmatmul.mubr.msk.f32.vlgmr.msra.gmra.mxu0 %vm21_vm1, %v690_v19 }
 0x63a   :  { %1293 = vmatprep.mubr.msk.f32.mxu0 %vm1310_vm0, %v1309_v0  ;;  %1286 = vmatpush3.msra.mxu0 %v1103_v23 }
 0x63b   :  { %1287 = vmatprep.subr.mxu0 %v1309_v0 }
 0x63c   :  { %1288 = vmatpush3.msra.mxu0 %v1102_v29 }
 0x63d   :  { %1289 = vmatprep.subr.mxu0 %v1309_v0 }
 0x63e   :  { %1290 = vmatpush3.msra.mxu0 %v1101_v30 }
 0x63f   :  { %1291 = vmatprep.subr.mxu0 %v1309_v0 }
 0x640   :  { %1292 = vmatpush3.msra.mxu0 %v1100_v31 }
 0x6f9   :  { %v770_v25 = vpop.f32.mrf.mxu0 }
 0x6fa   :  { %v771_v26 = vadd.f32 %v1091_v24, %v770_v25 }
 0x6fb   :  { %v1273_v27 = vpop.f32.mrf.mxu0 }
 0x6fc   :  { %v774_v28 = vmax.f32 %v771_v26, 0.0 }
 0x6fe   :  { %1283 = vmatmul.mubr.msk.f32.vlgmr.msra.gmra.mxu1 %vm21_vm1, %v774_v28 }
 0x6ff   :  { %1304 = vmatprep.mubr.msk.f32.mxu1 %vm1310_vm0, %v1309_v0  ;;  %1297 = vmatpush3.msra.mxu1 %v1110_v32 }
 0x700   :  { %1298 = vmatprep.subr.mxu1 %v1309_v0 }
 0x701   :  { %1299 = vmatpush3.msra.mxu1 %v1109_v38 }
 0x702   :  { %1300 = vmatprep.subr.mxu1 %v1309_v0 }
 0x703   :  { %1301 = vmatpush3.msra.mxu1 %v1108_v39 }
 0x704   :  { %1302 = vmatprep.subr.mxu1 %v1309_v0 }
 0x705   :  { %1303 = vmatpush3.msra.mxu1 %v1107_v40 }
 0x7be   :  { %v854_v34 = vpop.f32.mrf.mxu1 }
 0x7bf   :  { %v855_v35 = vadd.f32 %v1098_v33, %v854_v34 }
 0x7c0   :  { %v1284_v36 = vpop.f32.mrf.mxu1 }
 0x7c1   :  { %v858_v37 = vmax.f32 %v855_v35, 0.0 }
 0x7c3   :  { %1294 = vmatmul.mubr.msk.f32.vlgmr.msra.gmra.mxu0 %vm21_vm1, %v858_v37 }
 0x883   :  { %v938_v42 = vpop.f32.mrf.mxu0 }
 0x884   :  { %v939_v43 = vadd.f32 %v1105_v41, %v938_v42 }
 0x885   :  { %v1295_v44 = vpop.f32.mrf.mxu0 }
 0x886   :  { %v942_v45 = vmax.f32 %v939_v43, 0.0 }
 0x888   :  { %1305 = vmatmul.mubr.msk.f32.vlgmr.msra.gmra.mxu1 %vm21_vm1, %v942_v45 }
 0x948   :  { %v1022_v0 = vpop.f32.mrf.mxu1 }
 0x949   :  { %v1023_v47 = vadd.f32 %v1112_v46, %v1022_v0 }
 0x94a   :  { %v1306_v48 = vpop.f32.mrf.mxu1 }
 0x94b   :  { %v1026_v49 = vmax.f32 %v1023_v47, 0.0 }
 0x94d   :  { %v1027_v50 = vmin.f32 %v1026_v49, %v690_v19 }
 0x94f   :  { %1114 = vst.msk [vmem:[%s1617_s2 + $0x10] sm:$0xff] %vm21_vm1, %v1027_v50 }

</bundles_post_ra>
